<compile_context>
chip_gen: v7x
topology: tpu7x:2x2x1
jax: 0.10.0
libtpu: 0.0.40
codegen_flags: <defaults>
</compile_context>

<pallas_src>
import functools

import jax
import jax.numpy as jnp
from jax.experimental import pallas as pl
from jax.experimental.pallas import tpu as pltpu


# ---------------------------------------------------------------------------
# helpers
# ---------------------------------------------------------------------------
def _round_up(n, m):
    return ((n + m - 1) // m) * m


def _pad2(a, rows, cols):
    return jnp.pad(a, ((0, rows - a.shape[0]), (0, cols - a.shape[1])))


def _apply_act(y, name):
    if name == "relu":
        return jnp.maximum(y, 0.0)
    if name == "tanh":
        return jnp.tanh(y)
    return y


# ---------------------------------------------------------------------------
# fused kernel: whole forward for one batch tile
# ---------------------------------------------------------------------------
def _fused_vae_kernel(*refs, n_enc, n_dec, n_cls, L_p, use_dropout,
                      enc_act, cls_act, mxu_dtype):
    n_wb = 2 * (n_enc + n_dec + n_cls) + 6     # + (mu|sigma), final, cls_final
    n_masks = (n_enc + n_dec + n_cls) if use_dropout else 0

    x_ref, eps_ref = refs[0], refs[1]
    wb = refs[2:2 + n_wb]
    masks = refs[2 + n_wb:2 + n_wb + n_masks]
    xhat_ref, z_ref, yp_ref, kl_ref = refs[2 + n_wb + n_masks:
                                           2 + n_wb + n_masks + 4]

    it = iter(wb)
    enc_layers = [(next(it), next(it)) for _ in range(n_enc)]
    w_ms, b_ms = next(it), next(it)
    dec_layers = [(next(it), next(it)) for _ in range(n_dec)]
    w_fin, b_fin = next(it), next(it)
    cls_layers = [(next(it), next(it)) for _ in range(n_cls)]
    w_cf, b_cf = next(it), next(it)
    mask_it = iter(masks)

    def dense(h, w_ref, b_ref, act=None):
        w = w_ref[...]
        if mxu_dtype != jnp.float32:
            h = h.astype(mxu_dtype)
            w = w.astype(mxu_dtype)
        y = jnp.dot(h, w, preferred_element_type=jnp.float32) + b_ref[...]
        return _apply_act(y, act)

    def dropout(y):
        if not use_dropout:
            return y
        # mask is Bernoulli(keep)/keep, generated host-side with jax.random.
        # TODO(synk): move mask generation back onto the TPU hardware PRNG
        # (pltpu.prng_seed/prng_random_bits) once interpret-mode lowering exists.
        return y * next(mask_it)[...]

    # --- encode ---
    h = x_ref[...]
    for w, b in enc_layers:
        h = dropout(dense(h, w, b, enc_act))

    # merged mu / sigma matmul; s is the pre-activation of fc_sigma (= log sigma)
    ms = dense(h, w_ms, b_ms)
    mu = ms[:, :L_p]
    s = ms[:, L_p:]
    sigma = jnp.exp(s)

    # --- reparameterize + per-sample KL ---
    z = mu + sigma * eps_ref[...]
    z_ref[...] = z
    # padded latent lanes: mu = s = 0, sigma = 1 -> contribute exactly 0
    kl = -0.5 * jnp.sum(1.0 + 2.0 * s - mu * mu - sigma * sigma,
                        axis=1, keepdims=True)
    kl_ref[...] = jnp.broadcast_to(kl, kl_ref.shape)            # lane-dense store

    # --- decode ---
    d = z
    for w, b in dec_layers:
        d = dropout(dense(d, w, b, enc_act))
    xhat_ref[...] = dense(d, w_fin, b_fin)

    # --- classify ---
    c = z
    for w, b in cls_layers:
        c = dropout(dense(c, w, b, cls_act))
    yp_ref[...] = dense(c, w_cf, b_cf)


# ---------------------------------------------------------------------------
# forward builder (pads params/activations, sets up the grid, jits everything)
# ---------------------------------------------------------------------------
def build_forward(in_dim, latent_dim, encoder_hidden_dims, classifier_hidden_dims,
                  n_classes, dropout_rate=0.2, training=True,
                  encoder_act="relu", classifier_act="tanh",
                  mxu_dtype=jnp.float32):
    # NOTE: set mxu_dtype=jnp.bfloat16 on v6e/v7x for MXU-rate matmuls
    # (f32 kept as default for exact module semantics).
    enc_dims = list(encoder_hidden_dims)
    cls_dims = list(classifier_hidden_dims)

    in_p = _round_up(in_dim, 128)
    L_p = _round_up(latent_dim, 128)
    C_p = _round_up(n_classes, 128)
    enc_p = [_round_up(h, 128) for h in enc_dims]
    rev_p = list(reversed(enc_p))
    cls_p = [_round_up(h, 128) for h in cls_dims]
    enc_last_p = enc_p[-1] if enc_p else in_p
    dec_last_p = rev_p[-1] if rev_p else L_p
    cls_last_p = cls_p[-1] if cls_p else L_p
    KL_LANES = 128

    keep = 1.0 - float(dropout_rate)
    use_dropout = bool(training) and keep < 1.0
    mask_widths = (enc_p + rev_p + cls_p) if use_dropout else []

    kernel = functools.partial(
        _fused_vae_kernel,
        n_enc=len(enc_dims), n_dec=len(enc_dims), n_cls=len(cls_dims),
        L_p=L_p, use_dropout=use_dropout,
        enc_act=encoder_act, cls_act=classifier_act, mxu_dtype=mxu_dtype)

    @jax.jit
    def forward(params, x, key):
        B = x.shape[0]
        B8 = _round_up(B, 8)
        if B8 >= 128:
            B_pad = _round_up(B8, 128)
            TILE_B = 128
        else:
            B_pad = B8
            TILE_B = B8

        n_masks = len(mask_widths)
        keys = jax.random.split(key, 1 + n_masks)
        eps = jax.random.normal(keys[0], (B_pad, L_p), jnp.float32)
        # pre-scaled dropout masks: Bernoulli(keep) / keep
        drop_masks = [
            jax.random.bernoulli(keys[1 + i], keep, (B_pad, w)
                                 ).astype(jnp.float32) * (1.0 / keep)
            for i, w in enumerate(mask_widths)
        ]
        x_pad = _pad2(x.astype(jnp.float32), B_pad, in_p)

        # --- flatten + zero-pad parameters to lane-dense shapes ---
        wb = []
        d_p = in_p
        for (w, b), h_p in zip(params["encoder"], enc_p):
            wb.append(_pad2(w, d_p, h_p))
            wb.append(_pad2(b.reshape(1, -1), 1, h_p))
            d_p = h_p
        w_mu, b_mu = params["fc_mu"]
        w_sg, b_sg = params["fc_sigma"]
        wb.append(jnp.concatenate(
            [_pad2(w_mu, enc_last_p, L_p), _pad2(w_sg, enc_last_p, L_p)], axis=1))
        wb.append(jnp.concatenate(
            [_pad2(b_mu.reshape(1, -1), 1, L_p),
             _pad2(b_sg.reshape(1, -1), 1, L_p)], axis=1))
        d_p = L_p
        for (w, b), h_p in zip(params["decoder"], rev_p):
            wb.append(_pad2(w, d_p, h_p))
            wb.append(_pad2(b.reshape(1, -1), 1, h_p))
            d_p = h_p
        w_f, b_f = params["final_layer"]
        wb.append(_pad2(w_f, dec_last_p, in_p))
        wb.append(_pad2(b_f.reshape(1, -1), 1, in_p))
        d_p = L_p
        for (w, b), h_p in zip(params["classifier"], cls_p):
            wb.append(_pad2(w, d_p, h_p))
            wb.append(_pad2(b.reshape(1, -1), 1, h_p))
            d_p = h_p
        w_c, b_c = params["classifier_final"]
        wb.append(_pad2(w_c, cls_last_p, C_p))
        wb.append(_pad2(b_c.reshape(1, -1), 1, C_p))

        def batch_spec(cols):
            return pl.BlockSpec((TILE_B, cols), lambda i: (i, 0))

        def const_spec(shape):
            return pl.BlockSpec(shape, lambda i: (0, 0))       # grid-invariant

        in_specs = ([batch_spec(in_p), batch_spec(L_p)]
                    + [const_spec(a.shape) for a in wb]
                    + [batch_spec(w) for w in mask_widths])
        out_specs = (batch_spec(in_p), batch_spec(L_p),
                     batch_spec(C_p), batch_spec(KL_LANES))

        out_shape = (
            jax.ShapeDtypeStruct((B_pad, in_p), jnp.float32),
            jax.ShapeDtypeStruct((B_pad, L_p), jnp.float32),
            jax.ShapeDtypeStruct((B_pad, C_p), jnp.float32),
            jax.ShapeDtypeStruct((B_pad, KL_LANES), jnp.float32),
        )

        x_hat_p, z_p, y_p, kl_p = pl.pallas_call(
            kernel,
            grid=(B_pad // TILE_B,),
            in_specs=in_specs,
            out_specs=out_specs,
            out_shape=out_shape,
            compiler_params=pltpu.CompilerParams(
                dimension_semantics=("parallel",),
                vmem_limit_bytes=32 * 1024 * 1024),
        )(x_pad, eps, *wb, *drop_masks)

        x_hat = x_hat_p[:B, :in_dim]
        z = z_p[:B, :latent_dim]
        y_pred = y_p[:B, :n_classes]
        kl = jnp.mean(kl_p[:B, 0])
        return x_hat, z, y_pred, kl

    return forward


# ---------------------------------------------------------------------------
# parameter init (PyTorch-Linear-like U(-1/sqrt(in), 1/sqrt(in)))
# weights stored pre-transposed as [in, out] so y = x @ W + b
# ---------------------------------------------------------------------------
def init_linear(key, in_dim, out_dim):
    k1, k2 = jax.random.split(key)
    bound = 1.0 / jnp.sqrt(jnp.float32(in_dim))
    w = jax.random.uniform(k1, (in_dim, out_dim), jnp.float32, -bound, bound)
    b = jax.random.uniform(k2, (out_dim,), jnp.float32, -bound, bound)
    return w, b


def init_params(key, in_dim, latent_dim, encoder_hidden_dims,
                classifier_hidden_dims, n_classes):
    params = {}
    keys = iter(jax.random.split(key, 64))

    enc = []
    d = in_dim
    for h in encoder_hidden_dims:
        enc.append(init_linear(next(keys), d, h))
        d = h
    params["encoder"] = enc
    enc_last = encoder_hidden_dims[-1] if len(encoder_hidden_dims) else in_dim

    params["fc_mu"] = init_linear(next(keys), enc_last, latent_dim)
    params["fc_sigma"] = init_linear(next(keys), enc_last, latent_dim)

    rev = list(reversed(encoder_hidden_dims))
    dec = []
    d = latent_dim
    for h in rev:
        dec.append(init_linear(next(keys), d, h))
        d = h
    params["decoder"] = dec
    final_in = rev[-1] if len(rev) else latent_dim
    params["final_layer"] = init_linear(next(keys), final_in, in_dim)

    cls = []
    d = latent_dim
    for h in classifier_hidden_dims:
        cls.append(init_linear(next(keys), d, h))
        d = h
    params["classifier"] = cls
    cls_last = classifier_hidden_dims[-1] if len(classifier_hidden_dims) else latent_dim
    params["classifier_final"] = init_linear(next(keys), cls_last, n_classes)
    return params


# ---------------------------------------------------------------------------
if __name__ == "__main__":
    B = 8
    in_dim = 32
    latent_dim = 16
    encoder_hidden_dims = [64, 48]
    classifier_hidden_dims = [32]
    n_classes = 10
    dropout_rate = 0.2

    root = jax.random.PRNGKey(0)
    k_param, k_data, k_fwd = jax.random.split(root, 3)

    params = init_params(k_param, in_dim, latent_dim, encoder_hidden_dims,
                         classifier_hidden_dims, n_classes)
    x = jax.random.normal(k_data, (B, in_dim), jnp.float32)

    forward = build_forward(in_dim, latent_dim, encoder_hidden_dims,
                            classifier_hidden_dims, n_classes,
                            dropout_rate=dropout_rate, training=True)

    x_hat, z, y_pred, kl = forward(params, x, k_fwd)
    jax.block_until_ready((x_hat, z, y_pred, kl))

    assert x_hat.shape == (B, in_dim)
    assert z.shape == (B, latent_dim)
    assert y_pred.shape == (B, n_classes)
    assert kl.shape == ()
    assert bool(jnp.isfinite(kl))
    assert bool(jnp.all(jnp.isfinite(x_hat)))
    assert bool(jnp.all(jnp.isfinite(y_pred)))

    print("KERNEL_OK")
</pallas_src>

<mosaic_0001>
module attributes {stable_mosaic.version = 11 : i64} {
  func.func @_fused_vae_kernel(%arg0: i32, %arg1: memref<8x128xf32, #tpu.memory_space<vmem>>, %arg2: memref<8x128xf32, #tpu.memory_space<vmem>>, %arg3: memref<128x128xf32, #tpu.memory_space<vmem>>, %arg4: memref<1x128xf32, #tpu.memory_space<vmem>>, %arg5: memref<128x128xf32, #tpu.memory_space<vmem>>, %arg6: memref<1x128xf32, #tpu.memory_space<vmem>>, %arg7: memref<128x256xf32, #tpu.memory_space<vmem>>, %arg8: memref<1x256xf32, #tpu.memory_space<vmem>>, %arg9: memref<128x128xf32, #tpu.memory_space<vmem>>, %arg10: memref<1x128xf32, #tpu.memory_space<vmem>>, %arg11: memref<128x128xf32, #tpu.memory_space<vmem>>, %arg12: memref<1x128xf32, #tpu.memory_space<vmem>>, %arg13: memref<128x128xf32, #tpu.memory_space<vmem>>, %arg14: memref<1x128xf32, #tpu.memory_space<vmem>>, %arg15: memref<128x128xf32, #tpu.memory_space<vmem>>, %arg16: memref<1x128xf32, #tpu.memory_space<vmem>>, %arg17: memref<128x128xf32, #tpu.memory_space<vmem>>, %arg18: memref<1x128xf32, #tpu.memory_space<vmem>>, %arg19: memref<8x128xf32, #tpu.memory_space<vmem>>, %arg20: memref<8x128xf32, #tpu.memory_space<vmem>>, %arg21: memref<8x128xf32, #tpu.memory_space<vmem>>, %arg22: memref<8x128xf32, #tpu.memory_space<vmem>>, %arg23: memref<8x128xf32, #tpu.memory_space<vmem>>, %arg24: memref<8x128xf32, #tpu.memory_space<vmem>>, %arg25: memref<8x128xf32, #tpu.memory_space<vmem>>, %arg26: memref<8x128xf32, #tpu.memory_space<vmem>>, %arg27: memref<8x128xf32, #tpu.memory_space<vmem>>) attributes {dimension_semantics = [#tpu.dimension_semantics<parallel>], iteration_bounds = array<i64: 1>, scalar_prefetch = 0 : i64, scratch_operands = 0 : i64, tpu.core_type = #tpu.core_type<tc>, window_params = [{transform_indices = @transform_0, window_bounds = array<i64: 8, 128>}, {transform_indices = @transform_1, window_bounds = array<i64: 8, 128>}, {pipeline_mode = #tpu.pipeline_mode<synchronous>, transform_indices = @transform_2, window_bounds = array<i64: 128, 128>}, {pipeline_mode = #tpu.pipeline_mode<synchronous>, transform_indices = @transform_3, window_bounds = array<i64: 1, 128>}, {pipeline_mode = #tpu.pipeline_mode<synchronous>, transform_indices = @transform_4, window_bounds = array<i64: 128, 128>}, {pipeline_mode = #tpu.pipeline_mode<synchronous>, transform_indices = @transform_5, window_bounds = array<i64: 1, 128>}, {pipeline_mode = #tpu.pipeline_mode<synchronous>, transform_indices = @transform_6, window_bounds = array<i64: 128, 256>}, {pipeline_mode = #tpu.pipeline_mode<synchronous>, transform_indices = @transform_7, window_bounds = array<i64: 1, 256>}, {pipeline_mode = #tpu.pipeline_mode<synchronous>, transform_indices = @transform_8, window_bounds = array<i64: 128, 128>}, {pipeline_mode = #tpu.pipeline_mode<synchronous>, transform_indices = @transform_9, window_bounds = array<i64: 1, 128>}, {pipeline_mode = #tpu.pipeline_mode<synchronous>, transform_indices = @transform_10, window_bounds = array<i64: 128, 128>}, {pipeline_mode = #tpu.pipeline_mode<synchronous>, transform_indices = @transform_11, window_bounds = array<i64: 1, 128>}, {pipeline_mode = #tpu.pipeline_mode<synchronous>, transform_indices = @transform_12, window_bounds = array<i64: 128, 128>}, {pipeline_mode = #tpu.pipeline_mode<synchronous>, transform_indices = @transform_13, window_bounds = array<i64: 1, 128>}, {pipeline_mode = #tpu.pipeline_mode<synchronous>, transform_indices = @transform_14, window_bounds = array<i64: 128, 128>}, {pipeline_mode = #tpu.pipeline_mode<synchronous>, transform_indices = @transform_15, window_bounds = array<i64: 1, 128>}, {pipeline_mode = #tpu.pipeline_mode<synchronous>, transform_indices = @transform_16, window_bounds = array<i64: 128, 128>}, {pipeline_mode = #tpu.pipeline_mode<synchronous>, transform_indices = @transform_17, window_bounds = array<i64: 1, 128>}, {transform_indices = @transform_18, window_bounds = array<i64: 8, 128>}, {transform_indices = @transform_19, window_bounds = array<i64: 8, 128>}, {transform_indices = @transform_20, window_bounds = array<i64: 8, 128>}, {transform_indices = @transform_21, window_bounds = array<i64: 8, 128>}, {transform_indices = @transform_22, window_bounds = array<i64: 8, 128>}, {transform_indices = @transform_23, window_bounds = array<i64: 8, 128>}, {transform_indices = @transform_24, window_bounds = array<i64: 8, 128>}, {transform_indices = @transform_25, window_bounds = array<i64: 8, 128>}, {transform_indices = @transform_26, window_bounds = array<i64: 8, 128>}]} {
    %c0 = arith.constant 0 : index
    %c0_0 = arith.constant 0 : index
    %0 = vector.load %arg1[%c0, %c0_0] : memref<8x128xf32, #tpu.memory_space<vmem>>, vector<8x128xf32>
    %c0_1 = arith.constant 0 : index
    %c0_2 = arith.constant 0 : index
    %1 = vector.load %arg3[%c0_1, %c0_2] : memref<128x128xf32, #tpu.memory_space<vmem>>, vector<128x128xf32>
    %cst = arith.constant dense<0.000000e+00> : vector<8x128xf32>
    %2 = tpu.matmul %0, %1, %cst {dimension_numbers = #tpu.dot_dimension_numbers<[1], [0], [0], [1], [0, 0, 1, 1], [], []>} : vector<8x128xf32>, vector<128x128xf32>, vector<8x128xf32> -> vector<8x128xf32>
    %c0_3 = arith.constant 0 : index
    %c0_4 = arith.constant 0 : index
    %3 = vector.load %arg4[%c0_3, %c0_4] : memref<1x128xf32, #tpu.memory_space<vmem>>, vector<1x128xf32>
    %4 = vector.broadcast %3 : vector<1x128xf32> to vector<8x128xf32>
    %5 = arith.addf %2, %4 : vector<8x128xf32>
    %cst_5 = arith.constant 0.000000e+00 : f32
    %6 = vector.broadcast %cst_5 : f32 to vector<8x128xf32>
    %7 = arith.maximumf %5, %6 : vector<8x128xf32>
    %c0_6 = arith.constant 0 : index
    %c0_7 = arith.constant 0 : index
    %8 = vector.load %arg19[%c0_6, %c0_7] : memref<8x128xf32, #tpu.memory_space<vmem>>, vector<8x128xf32>
    %9 = arith.mulf %7, %8 : vector<8x128xf32>
    %c0_8 = arith.constant 0 : index
    %c0_9 = arith.constant 0 : index
    %10 = vector.load %arg5[%c0_8, %c0_9] : memref<128x128xf32, #tpu.memory_space<vmem>>, vector<128x128xf32>
    %cst_10 = arith.constant dense<0.000000e+00> : vector<8x128xf32>
    %11 = tpu.matmul %9, %10, %cst_10 {dimension_numbers = #tpu.dot_dimension_numbers<[1], [0], [0], [1], [0, 0, 1, 1], [], []>} : vector<8x128xf32>, vector<128x128xf32>, vector<8x128xf32> -> vector<8x128xf32>
    %c0_11 = arith.constant 0 : index
    %c0_12 = arith.constant 0 : index
    %12 = vector.load %arg6[%c0_11, %c0_12] : memref<1x128xf32, #tpu.memory_space<vmem>>, vector<1x128xf32>
    %13 = vector.broadcast %12 : vector<1x128xf32> to vector<8x128xf32>
    %14 = arith.addf %11, %13 : vector<8x128xf32>
    %cst_13 = arith.constant 0.000000e+00 : f32
    %15 = vector.broadcast %cst_13 : f32 to vector<8x128xf32>
    %16 = arith.maximumf %14, %15 : vector<8x128xf32>
    %c0_14 = arith.constant 0 : index
    %c0_15 = arith.constant 0 : index
    %17 = vector.load %arg20[%c0_14, %c0_15] : memref<8x128xf32, #tpu.memory_space<vmem>>, vector<8x128xf32>
    %18 = arith.mulf %16, %17 : vector<8x128xf32>
    %c0_16 = arith.constant 0 : index
    %c0_17 = arith.constant 0 : index
    %19 = vector.load %arg7[%c0_16, %c0_17] : memref<128x256xf32, #tpu.memory_space<vmem>>, vector<128x256xf32>
    %cst_18 = arith.constant dense<0.000000e+00> : vector<8x256xf32>
    %20 = tpu.matmul %18, %19, %cst_18 {dimension_numbers = #tpu.dot_dimension_numbers<[1], [0], [0], [1], [0, 0, 1, 1], [], []>} : vector<8x128xf32>, vector<128x256xf32>, vector<8x256xf32> -> vector<8x256xf32>
    %c0_19 = arith.constant 0 : index
    %c0_20 = arith.constant 0 : index
    %21 = vector.load %arg8[%c0_19, %c0_20] : memref<1x256xf32, #tpu.memory_space<vmem>>, vector<1x256xf32>
    %22 = vector.broadcast %21 : vector<1x256xf32> to vector<8x256xf32>
    %23 = arith.addf %20, %22 : vector<8x256xf32>
    %24 = vector.extract_strided_slice %23 {offsets = [0, 0], sizes = [8, 128], strides = [1, 1]} : vector<8x256xf32> to vector<8x128xf32>
    %25 = vector.extract_strided_slice %23 {offsets = [0, 128], sizes = [8, 128], strides = [1, 1]} : vector<8x256xf32> to vector<8x128xf32>
    %26 = math.exp %25 : vector<8x128xf32>
    %c0_21 = arith.constant 0 : index
    %c0_22 = arith.constant 0 : index
    %27 = vector.load %arg2[%c0_21, %c0_22] : memref<8x128xf32, #tpu.memory_space<vmem>>, vector<8x128xf32>
    %28 = arith.mulf %26, %27 : vector<8x128xf32>
    %29 = arith.addf %24, %28 : vector<8x128xf32>
    %c0_23 = arith.constant 0 : index
    %c0_24 = arith.constant 0 : index
    %30 = vector.load %arg25[%c0_23, %c0_24] : memref<8x128xf32, #tpu.memory_space<vmem>>, vector<8x128xf32>
    tpu.vector_store %arg25[%c0_23, %c0_24], %29 {strides = array<i32>} : memref<8x128xf32, #tpu.memory_space<vmem>>, vector<8x128xf32>,
    %cst_25 = arith.constant 2.000000e+00 : f32
    %31 = vector.broadcast %cst_25 : f32 to vector<8x128xf32>
    %32 = arith.mulf %31, %25 : vector<8x128xf32>
    %cst_26 = arith.constant 1.000000e+00 : f32
    %33 = vector.broadcast %cst_26 : f32 to vector<8x128xf32>
    %34 = arith.addf %33, %32 : vector<8x128xf32>
    %35 = arith.mulf %24, %24 : vector<8x128xf32>
    %36 = arith.subf %34, %35 : vector<8x128xf32>
    %37 = arith.mulf %26, %26 : vector<8x128xf32>
    %38 = arith.subf %36, %37 : vector<8x128xf32>
    %cst_27 = arith.constant dense<0.000000e+00> : vector<8xf32>
    %39 = vector.multi_reduction <add>, %38, %cst_27 [1] : vector<8x128xf32> to vector<8xf32>
    %40 = vector.shape_cast %39 : vector<8xf32> to vector<8x1xf32>
    %cst_28 = arith.constant -5.000000e-01 : f32
    %41 = vector.broadcast %cst_28 : f32 to vector<8x1xf32>
    %42 = arith.mulf %41, %40 : vector<8x1xf32>
    %43 = vector.shape_cast %42 : vector<8x1xf32> to vector<8x1xf32>
    %44 = vector.broadcast %43 : vector<8x1xf32> to vector<8x128xf32>
    %c0_29 = arith.constant 0 : index
    %c0_30 = arith.constant 0 : index
    %45 = vector.load %arg27[%c0_29, %c0_30] : memref<8x128xf32, #tpu.memory_space<vmem>>, vector<8x128xf32>
    tpu.vector_store %arg27[%c0_29, %c0_30], %44 {strides = array<i32>} : memref<8x128xf32, #tpu.memory_space<vmem>>, vector<8x128xf32>,
    %c0_31 = arith.constant 0 : index
    %c0_32 = arith.constant 0 : index
    %46 = vector.load %arg9[%c0_31, %c0_32] : memref<128x128xf32, #tpu.memory_space<vmem>>, vector<128x128xf32>
    %cst_33 = arith.constant dense<0.000000e+00> : vector<8x128xf32>
    %47 = tpu.matmul %29, %46, %cst_33 {dimension_numbers = #tpu.dot_dimension_numbers<[1], [0], [0], [1], [0, 0, 1, 1], [], []>} : vector<8x128xf32>, vector<128x128xf32>, vector<8x128xf32> -> vector<8x128xf32>
    %c0_34 = arith.constant 0 : index
    %c0_35 = arith.constant 0 : index
    %48 = vector.load %arg10[%c0_34, %c0_35] : memref<1x128xf32, #tpu.memory_space<vmem>>, vector<1x128xf32>
    %49 = vector.broadcast %48 : vector<1x128xf32> to vector<8x128xf32>
    %50 = arith.addf %47, %49 : vector<8x128xf32>
    %cst_36 = arith.constant 0.000000e+00 : f32
    %51 = vector.broadcast %cst_36 : f32 to vector<8x128xf32>
    %52 = arith.maximumf %50, %51 : vector<8x128xf32>
    %c0_37 = arith.constant 0 : index
    %c0_38 = arith.constant 0 : index
    %53 = vector.load %arg21[%c0_37, %c0_38] : memref<8x128xf32, #tpu.memory_space<vmem>>, vector<8x128xf32>
    %54 = arith.mulf %52, %53 : vector<8x128xf32>
    %c0_39 = arith.constant 0 : index
    %c0_40 = arith.constant 0 : index
    %55 = vector.load %arg11[%c0_39, %c0_40] : memref<128x128xf32, #tpu.memory_space<vmem>>, vector<128x128xf32>
    %cst_41 = arith.constant dense<0.000000e+00> : vector<8x128xf32>
    %56 = tpu.matmul %54, %55, %cst_41 {dimension_numbers = #tpu.dot_dimension_numbers<[1], [0], [0], [1], [0, 0, 1, 1], [], []>} : vector<8x128xf32>, vector<128x128xf32>, vector<8x128xf32> -> vector<8x128xf32>
    %c0_42 = arith.constant 0 : index
    %c0_43 = arith.constant 0 : index
    %57 = vector.load %arg12[%c0_42, %c0_43] : memref<1x128xf32, #tpu.memory_space<vmem>>, vector<1x128xf32>
    %58 = vector.broadcast %57 : vector<1x128xf32> to vector<8x128xf32>
    %59 = arith.addf %56, %58 : vector<8x128xf32>
    %cst_44 = arith.constant 0.000000e+00 : f32
    %60 = vector.broadcast %cst_44 : f32 to vector<8x128xf32>
    %61 = arith.maximumf %59, %60 : vector<8x128xf32>
    %c0_45 = arith.constant 0 : index
    %c0_46 = arith.constant 0 : index
    %62 = vector.load %arg22[%c0_45, %c0_46] : memref<8x128xf32, #tpu.memory_space<vmem>>, vector<8x128xf32>
    %63 = arith.mulf %61, %62 : vector<8x128xf32>
    %c0_47 = arith.constant 0 : index
    %c0_48 = arith.constant 0 : index
    %64 = vector.load %arg13[%c0_47, %c0_48] : memref<128x128xf32, #tpu.memory_space<vmem>>, vector<128x128xf32>
    %cst_49 = arith.constant dense<0.000000e+00> : vector<8x128xf32>
    %65 = tpu.matmul %63, %64, %cst_49 {dimension_numbers = #tpu.dot_dimension_numbers<[1], [0], [0], [1], [0, 0, 1, 1], [], []>} : vector<8x128xf32>, vector<128x128xf32>, vector<8x128xf32> -> vector<8x128xf32>
    %c0_50 = arith.constant 0 : index
    %c0_51 = arith.constant 0 : index
    %66 = vector.load %arg14[%c0_50, %c0_51] : memref<1x128xf32, #tpu.memory_space<vmem>>, vector<1x128xf32>
    %67 = vector.broadcast %66 : vector<1x128xf32> to vector<8x128xf32>
    %68 = arith.addf %65, %67 : vector<8x128xf32>
    %c0_52 = arith.constant 0 : index
    %c0_53 = arith.constant 0 : index
    %69 = vector.load %arg24[%c0_52, %c0_53] : memref<8x128xf32, #tpu.memory_space<vmem>>, vector<8x128xf32>
    tpu.vector_store %arg24[%c0_52, %c0_53], %68 {strides = array<i32>} : memref<8x128xf32, #tpu.memory_space<vmem>>, vector<8x128xf32>,
    %c0_54 = arith.constant 0 : index
    %c0_55 = arith.constant 0 : index
    %70 = vector.load %arg15[%c0_54, %c0_55] : memref<128x128xf32, #tpu.memory_space<vmem>>, vector<128x128xf32>
    %cst_56 = arith.constant dense<0.000000e+00> : vector<8x128xf32>
    %71 = tpu.matmul %29, %70, %cst_56 {dimension_numbers = #tpu.dot_dimension_numbers<[1], [0], [0], [1], [0, 0, 1, 1], [], []>} : vector<8x128xf32>, vector<128x128xf32>, vector<8x128xf32> -> vector<8x128xf32>
    %c0_57 = arith.constant 0 : index
    %c0_58 = arith.constant 0 : index
    %72 = vector.load %arg16[%c0_57, %c0_58] : memref<1x128xf32, #tpu.memory_space<vmem>>, vector<1x128xf32>
    %73 = vector.broadcast %72 : vector<1x128xf32> to vector<8x128xf32>
    %74 = arith.addf %71, %73 : vector<8x128xf32>
    %75 = math.tanh %74 : vector<8x128xf32>
    %c0_59 = arith.constant 0 : index
    %c0_60 = arith.constant 0 : index
    %76 = vector.load %arg23[%c0_59, %c0_60] : memref<8x128xf32, #tpu.memory_space<vmem>>, vector<8x128xf32>
    %77 = arith.mulf %75, %76 : vector<8x128xf32>
    %c0_61 = arith.constant 0 : index
    %c0_62 = arith.constant 0 : index
    %78 = vector.load %arg17[%c0_61, %c0_62] : memref<128x128xf32, #tpu.memory_space<vmem>>, vector<128x128xf32>
    %cst_63 = arith.constant dense<0.000000e+00> : vector<8x128xf32>
    %79 = tpu.matmul %77, %78, %cst_63 {dimension_numbers = #tpu.dot_dimension_numbers<[1], [0], [0], [1], [0, 0, 1, 1], [], []>} : vector<8x128xf32>, vector<128x128xf32>, vector<8x128xf32> -> vector<8x128xf32>
    %c0_64 = arith.constant 0 : index
    %c0_65 = arith.constant 0 : index
    %80 = vector.load %arg18[%c0_64, %c0_65] : memref<1x128xf32, #tpu.memory_space<vmem>>, vector<1x128xf32>
    %81 = vector.broadcast %80 : vector<1x128xf32> to vector<8x128xf32>
    %82 = arith.addf %79, %81 : vector<8x128xf32>
    %c0_66 = arith.constant 0 : index
    %c0_67 = arith.constant 0 : index
    %83 = vector.load %arg26[%c0_66, %c0_67] : memref<8x128xf32, #tpu.memory_space<vmem>>, vector<8x128xf32>
    tpu.vector_store %arg26[%c0_66, %c0_67], %82 {strides = array<i32>} : memref<8x128xf32, #tpu.memory_space<vmem>>, vector<8x128xf32>,
    return
  }
  func.func @transform_0(%arg0: i32) -> (i32, i32) {
    %c0_i32 = arith.constant 0 : i32
    %c0_i32_0 = arith.constant 0 : i32
    return %arg0, %c0_i32 : i32, i32
  }
  func.func @transform_1(%arg0: i32) -> (i32, i32) {
    %c0_i32 = arith.constant 0 : i32
    %c0_i32_0 = arith.constant 0 : i32
    return %arg0, %c0_i32 : i32, i32
  }
  func.func @transform_2(%arg0: i32) -> (i32, i32) {
    %c0_i32 = arith.constant 0 : i32
    %c0_i32_0 = arith.constant 0 : i32
    %c0_i32_1 = arith.constant 0 : i32
    return %c0_i32, %c0_i32_0 : i32, i32
  }
  func.func @transform_3(%arg0: i32) -> (i32, i32) {
    %c0_i32 = arith.constant 0 : i32
    %c0_i32_0 = arith.constant 0 : i32
    %c0_i32_1 = arith.constant 0 : i32
    return %c0_i32, %c0_i32_0 : i32, i32
  }
  func.func @transform_4(%arg0: i32) -> (i32, i32) {
    %c0_i32 = arith.constant 0 : i32
    %c0_i32_0 = arith.constant 0 : i32
    %c0_i32_1 = arith.constant 0 : i32
    return %c0_i32, %c0_i32_0 : i32, i32
  }
  func.func @transform_5(%arg0: i32) -> (i32, i32) {
    %c0_i32 = arith.constant 0 : i32
    %c0_i32_0 = arith.constant 0 : i32
    %c0_i32_1 = arith.constant 0 : i32
    return %c0_i32, %c0_i32_0 : i32, i32
  }
  func.func @transform_6(%arg0: i32) -> (i32, i32) {
    %c0_i32 = arith.constant 0 : i32
    %c0_i32_0 = arith.constant 0 : i32
    %c0_i32_1 = arith.constant 0 : i32
    return %c0_i32, %c0_i32_0 : i32, i32
  }
  func.func @transform_7(%arg0: i32) -> (i32, i32) {
    %c0_i32 = arith.constant 0 : i32
    %c0_i32_0 = arith.constant 0 : i32
    %c0_i32_1 = arith.constant 0 : i32
    return %c0_i32, %c0_i32_0 : i32, i32
  }
  func.func @transform_8(%arg0: i32) -> (i32, i32) {
    %c0_i32 = arith.constant 0 : i32
    %c0_i32_0 = arith.constant 0 : i32
    %c0_i32_1 = arith.constant 0 : i32
    return %c0_i32, %c0_i32_0 : i32, i32
  }
  func.func @transform_9(%arg0: i32) -> (i32, i32) {
    %c0_i32 = arith.constant 0 : i32
    %c0_i32_0 = arith.constant 0 : i32
    %c0_i32_1 = arith.constant 0 : i32
    return %c0_i32, %c0_i32_0 : i32, i32
  }
  func.func @transform_10(%arg0: i32) -> (i32, i32) {
    %c0_i32 = arith.constant 0 : i32
    %c0_i32_0 = arith.constant 0 : i32
    %c0_i32_1 = arith.constant 0 : i32
    return %c0_i32, %c0_i32_0 : i32, i32
  }
  func.func @transform_11(%arg0: i32) -> (i32, i32) {
    %c0_i32 = arith.constant 0 : i32
    %c0_i32_0 = arith.constant 0 : i32
    %c0_i32_1 = arith.constant 0 : i32
    return %c0_i32, %c0_i32_0 : i32, i32
  }
  func.func @transform_12(%arg0: i32) -> (i32, i32) {
    %c0_i32 = arith.constant 0 : i32
    %c0_i32_0 = arith.constant 0 : i32
    %c0_i32_1 = arith.constant 0 : i32
    return %c0_i32, %c0_i32_0 : i32, i32
  }
  func.func @transform_13(%arg0: i32) -> (i32, i32) {
    %c0_i32 = arith.constant 0 : i32
    %c0_i32_0 = arith.constant 0 : i32
    %c0_i32_1 = arith.constant 0 : i32
    return %c0_i32, %c0_i32_0 : i32, i32
  }
  func.func @transform_14(%arg0: i32) -> (i32, i32) {
    %c0_i32 = arith.constant 0 : i32
    %c0_i32_0 = arith.constant 0 : i32
    %c0_i32_1 = arith.constant 0 : i32
    return %c0_i32, %c0_i32_0 : i32, i32
  }
  func.func @transform_15(%arg0: i32) -> (i32, i32) {
    %c0_i32 = arith.constant 0 : i32
    %c0_i32_0 = arith.constant 0 : i32
    %c0_i32_1 = arith.constant 0 : i32
    return %c0_i32, %c0_i32_0 : i32, i32
  }
  func.func @transform_16(%arg0: i32) -> (i32, i32) {
    %c0_i32 = arith.constant 0 : i32
    %c0_i32_0 = arith.constant 0 : i32
    %c0_i32_1 = arith.constant 0 : i32
    return %c0_i32, %c0_i32_0 : i32, i32
  }
  func.func @transform_17(%arg0: i32) -> (i32, i32) {
    %c0_i32 = arith.constant 0 : i32
    %c0_i32_0 = arith.constant 0 : i32
    %c0_i32_1 = arith.constant 0 : i32
    return %c0_i32, %c0_i32_0 : i32, i32
  }
  func.func @transform_18(%arg0: i32) -> (i32, i32) {
    %c0_i32 = arith.constant 0 : i32
    %c0_i32_0 = arith.constant 0 : i32
    return %arg0, %c0_i32 : i32, i32
  }
  func.func @transform_19(%arg0: i32) -> (i32, i32) {
    %c0_i32 = arith.constant 0 : i32
    %c0_i32_0 = arith.constant 0 : i32
    return %arg0, %c0_i32 : i32, i32
  }
  func.func @transform_20(%arg0: i32) -> (i32, i32) {
    %c0_i32 = arith.constant 0 : i32
    %c0_i32_0 = arith.constant 0 : i32
    return %arg0, %c0_i32 : i32, i32
  }
  func.func @transform_21(%arg0: i32) -> (i32, i32) {
    %c0_i32 = arith.constant 0 : i32
    %c0_i32_0 = arith.constant 0 : i32
    return %arg0, %c0_i32 : i32, i32
  }
  func.func @transform_22(%arg0: i32) -> (i32, i32) {
    %c0_i32 = arith.constant 0 : i32
    %c0_i32_0 = arith.constant 0 : i32
    return %arg0, %c0_i32 : i32, i32
  }
  func.func @transform_23(%arg0: i32) -> (i32, i32) {
    %c0_i32 = arith.constant 0 : i32
    %c0_i32_0 = arith.constant 0 : i32
    return %arg0, %c0_i32 : i32, i32
  }
  func.func @transform_24(%arg0: i32) -> (i32, i32) {
    %c0_i32 = arith.constant 0 : i32
    %c0_i32_0 = arith.constant 0 : i32
    return %arg0, %c0_i32 : i32, i32
  }
  func.func @transform_25(%arg0: i32) -> (i32, i32) {
    %c0_i32 = arith.constant 0 : i32
    %c0_i32_0 = arith.constant 0 : i32
    return %arg0, %c0_i32 : i32, i32
  }
  func.func @transform_26(%arg0: i32) -> (i32, i32) {
    %c0_i32 = arith.constant 0 : i32
    %c0_i32_0 = arith.constant 0 : i32
    return %arg0, %c0_i32 : i32, i32
  }
}

</mosaic_0001>

<bundles_post_ra>
// kernel: forward.1
= control target key start
LH: loop header
LB: loop body
LE: loop exit
PB: predicated region body
PF: predicated region fallthrough
CT: control target
= control target key end

     0   :  { %s2309_s0 = inlined_call_operand.vmem [shape: f32[8,128], index: 0, kind: input, shape index: {}]   ;;  %s2310_s1 = inlined_call_operand.vmem [shape: f32[8,128], index: 1, kind: input, shape index: {}]   ;;  %s2311_s2 = inlined_call_operand.vmem [shape: f32[128,128], index: 2, kind: input, shape index: {}]   ;;  %s2312_s3 = inlined_call_operand.vmem [shape: f32[1,128], index: 3, kind: input, shape index: {}]   ;;  %s2313_s4 = inlined_call_operand.vmem [shape: f32[128,128], index: 4, kind: input, shape index: {}]   ;;  %s2314_s5 = inlined_call_operand.vmem [shape: f32[1,128], index: 5, kind: input, shape index: {}]   ;;  %s2315_s6 = inlined_call_operand.vmem [shape: f32[128,256], index: 6, kind: input, shape index: {}]   ;;  %s2316_s7 = inlined_call_operand.vmem [shape: f32[1,256], index: 7, kind: input, shape index: {}]   ;;  %s2317_s8 = inlined_call_operand.vmem [shape: f32[128,128], index: 8, kind: input, shape index: {}]   ;;  %s2318_s9 = inlined_call_operand.vmem [shape: f32[1,128], index: 9, kind: input, shape index: {}]   ;;  %s2319_s10 = inlined_call_operand.vmem [shape: f32[128,128], index: 10, kind: input, shape index: {}]   ;;  %s2320_s11 = inlined_call_operand.vmem [shape: f32[1,128], index: 11, kind: input, shape index: {}]   ;;  %s2321_s12 = inlined_call_operand.vmem [shape: f32[128,128], index: 12, kind: input, shape index: {}]   ;;  %s2322_s13 = inlined_call_operand.vmem [shape: f32[1,128], index: 13, kind: input, shape index: {}]   ;;  %s2323_s14 = inlined_call_operand.vmem [shape: f32[128,128], index: 14, kind: input, shape index: {}]   ;;  %s2324_s15 = inlined_call_operand.vmem [shape: f32[1,128], index: 15, kind: input, shape index: {}]   ;;  %s2325_s16 = inlined_call_operand.vmem [shape: f32[128,128], index: 16, kind: input, shape index: {}]   ;;  %s2326_s17 = inlined_call_operand.vmem [shape: f32[1,128], index: 17, kind: input, shape index: {}]   ;;  %s2327_s18 = inlined_call_operand.vmem [shape: f32[8,128], index: 18, kind: input, shape index: {}]   ;;  %s2328_s19 = inlined_call_operand.vmem [shape: f32[8,128], index: 19, kind: input, shape index: {}]   ;;  %s2329_s20 = inlined_call_operand.vmem [shape: f32[8,128], index: 20, kind: input, shape index: {}]   ;;  %s2330_s21 = inlined_call_operand.vmem [shape: f32[8,128], index: 21, kind: input, shape index: {}]   ;;  %s2331_s22 = inlined_call_operand.vmem [shape: f32[8,128], index: 22, kind: input, shape index: {}]   ;;  %s2332_s23 = inlined_call_operand.hbm [shape: f32[8,128], index: 23, kind: output, shape index: {0}]   ;;  %s2333_s24 = inlined_call_operand.hbm [shape: f32[8,128], index: 24, kind: output, shape index: {1}]   ;;  %s2334_s25 = inlined_call_operand.hbm [shape: f32[8,128], index: 25, kind: output, shape index: {2}]   ;;  %s2335_s26 = inlined_call_operand.vmem [shape: f32[8,128], index: 26, kind: output, shape index: {3}]  }
   0x1   :  { %2341 = sst [smem:[#allocation9_spill]] %s2309_s0 }
   0x2   :  { %2342 = sst [smem:[#allocation10_spill]] %s2310_s1 }
   0x3   :  { %2343 = sst [smem:[#allocation11_spill]] %s2311_s2 }
   0x4   :  { %2344 = sst [smem:[#allocation12_spill]] %s2312_s3 }
   0x5   :  { %2345 = sst [smem:[#allocation13_spill]] %s2313_s4 }
   0x6   :  { %2346 = sst [smem:[#allocation14_spill]] %s2314_s5 }
   0x7   :  { %2347 = sst [smem:[#allocation15_spill]] %s2315_s6 }
   0x8   :  { %2348 = sst [smem:[#allocation16_spill]] %s2316_s7 }
   0x9   :  { %2349 = sst [smem:[#allocation17_spill]] %s2317_s8 }
   0xa   :  { %2350 = sst [smem:[#allocation18_spill]] %s2318_s9 }
   0xb   :  { %2351 = sst [smem:[#allocation19_spill]] %s2319_s10 }
   0xc   :  { %32 = vsyncpa [#allocation3], 0  ;;  %s2352_s7 = sld [smem:[#allocation11_spill]]  ;;  %v1576_v3 = vmov 0.0|0.0   ;;  %vm1577_vm0 = vmmov 0   ;;  %v1578_v6 = vmov 0.0  }
   0xd   :  { %1296 = vmatprep.subr.bf16.mxu0 %v1576_v3  ;;  %1083 = vmatprep.mubr.msk.f32.mxu0 %vm1577_vm0, %v1578_v6  ;;  %s2353_s27 = sld [smem:[#allocation13_spill]] }
   0xe   :  { %1320 = vmatprep.subr.bf16.mxu1 %v1576_v3  ;;  %1118 = vmatprep.mubr.msk.f32.mxu1 %vm1577_vm0, %v1578_v6 }
  0x12   :  { %v81_v0 = vld [vmem:[%s2352_s7] sm:$0xff]  ;;  %v82_v1 = vld [vmem:[%s2352_s7 + $0x8] sm:$0xff]  ;;  %v83_v2 = vld [vmem:[%s2352_s7 + $0x10] sm:$0xff] }
  0x13   :  { %v1297_v4 = vpack.c.bf16 %v82_v1, %v81_v0  ;;  %v84_v5 = vld [vmem:[%s2352_s7 + $0x18] sm:$0xff]  ;;  %v85_v8 = vld [vmem:[%s2352_s7 + $0x20] sm:$0xff]  ;;  %v86_v9 = vld [vmem:[%s2352_s7 + $0x28] sm:$0xff] }
  0x14   :  { %v1300_v7 = vpack.c.bf16 %v84_v5, %v83_v2  ;;  %v177_v10 = vld [vmem:[%s2353_s27] sm:$0xff]  ;;  %v178_v11 = vld [vmem:[%s2353_s27 + $0x8] sm:$0xff]  ;;  %v179_v12 = vld [vmem:[%s2353_s27 + $0x10] sm:$0xff]  ;;  %v1303_v14 = vpack.c.bf16 %v86_v9, %v85_v8 }
  0x15   :  { %1298 = vmatpush3.bf16.msra.mxu0 %v1297_v4  ;;  %v180_v13 = vld [vmem:[%s2353_s27 + $0x18] sm:$0xff]  ;;  %v1321_v15 = vpack.c.bf16 %v178_v11, %v177_v10  ;;  %v87_v16 = vld [vmem:[%s2352_s7 + $0x30] sm:$0xff]  ;;  %v181_v19 = vld [vmem:[%s2353_s27 + $0x20] sm:$0xff] }
  0x16   :  { %1299 = vmatprep.subr.bf16.mxu0 %v1576_v3  ;;  %v88_v17 = vld [vmem:[%s2352_s7 + $0x38] sm:$0xff]  ;;  %v1324_v18 = vpack.c.bf16 %v180_v13, %v179_v12  ;;  %v182_v20 = vld [vmem:[%s2353_s27 + $0x28] sm:$0xff] }
  0x17   :  { %1322 = vmatpush3.bf16.msra.mxu1 %v1321_v15 }
  0x18   :  { %1323 = vmatprep.subr.bf16.mxu1 %v1576_v3 }
  0x19   :  { %1301 = vmatpush3.bf16.msra.mxu0 %v1300_v7 }
  0x1a   :  { %1302 = vmatprep.subr.bf16.mxu0 %v1576_v3 }
  0x1b   :  { %33 = vsyncpa [#allocation5], 0  ;;  %v1306_v21 = vpack.c.bf16 %v88_v17, %v87_v16  ;;  %v89_v22 = vld [vmem:[%s2352_s7 + $0x40] sm:$0xff]  ;;  %v90_v23 = vld [vmem:[%s2352_s7 + $0x48] sm:$0xff]  ;;  %1325 = vmatpush3.bf16.msra.mxu1 %v1324_v18  ;;  %v1327_v24 = vpack.c.bf16 %v182_v20, %v181_v19  ;;  %s2354_s0 = sld [smem:[#allocation9_spill]]  ;;  %s2355_s8 = sld [smem:[#allocation15_spill]] }
  0x1c   :  { %1326 = vmatprep.subr.bf16.mxu1 %v1576_v3  ;;  %v183_v25 = vld [vmem:[%s2353_s27 + $0x30] sm:$0xff]  ;;  %v184_v26 = vld [vmem:[%s2353_s27 + $0x38] sm:$0xff]  ;;  %v1309_v27 = vpack.c.bf16 %v90_v23, %v89_v22  ;;  %v185_v31 = vld [vmem:[%s2353_s27 + $0x40] sm:$0xff]  ;;  %s2356_s6 = sld [smem:[#allocation12_spill]]  ;;  %s2357_s3 = sld [smem:[#allocation17_spill]] }
  0x1d   :  { %1304 = vmatpush3.bf16.msra.mxu0 %v1303_v14  ;;  %v91_v28 = vld [vmem:[%s2352_s7 + $0x50] sm:$0xff]  ;;  %v92_v29 = vld [vmem:[%s2352_s7 + $0x58] sm:$0xff]  ;;  %v1330_v30 = vpack.c.bf16 %v184_v26, %v183_v25  ;;  %v186_v32 = vld [vmem:[%s2353_s27 + $0x48] sm:$0xff]  ;;  %s2358_s10 = sld [smem:[#allocation14_spill]]  ;;  %s2361_s2 = sld [smem:[#allocation19_spill]] }
  0x1e   :  { %1305 = vmatprep.subr.bf16.mxu0 %v1576_v3  ;;  %v1312_v33 = vpack.c.bf16 %v92_v29, %v91_v28  ;;  %v93_v34 = vld [vmem:[%s2352_s7 + $0x60] sm:$0xff]  ;;  %v94_v35 = vld [vmem:[%s2352_s7 + $0x68] sm:$0xff]  ;;  %v1333_v36 = vpack.c.bf16 %v186_v32, %v185_v31  ;;  %v187_v37 = vld [vmem:[%s2353_s27 + $0x50] sm:$0xff] }
  0x1f   :  { %1328 = vmatpush3.bf16.msra.mxu1 %v1327_v24  ;;  %v188_v38 = vld [vmem:[%s2353_s27 + $0x58] sm:$0xff]  ;;  %v1315_v39 = vpack.c.bf16 %v94_v35, %v93_v34  ;;  %v95_v40 = vld [vmem:[%s2352_s7 + $0x70] sm:$0xff]  ;;  %v189_v45 = vld [vmem:[%s2353_s27 + $0x60] sm:$0xff] }
  0x20   :  { %1329 = vmatprep.subr.bf16.mxu1 %v1576_v3  ;;  %v96_v41 = vld [vmem:[%s2352_s7 + $0x78] sm:$0xff]  ;;  %v1336_v42 = vpack.c.bf16 %v188_v38, %v187_v37  ;;  %v190_v46 = vld [vmem:[%s2353_s27 + $0x68] sm:$0xff]  ;;  %v191_v48 = vld [vmem:[%s2353_s27 + $0x70] sm:$0xff]  ;;  %s2362_s7 = sld [smem:[#allocation18_spill]] }
  0x21   :  { %1307 = vmatpush3.bf16.msra.mxu0 %v1306_v21  ;;  %v1318_v43 = vpack.c.bf16 %v96_v41, %v95_v40  ;;  %v80_v44 = vld [vmem:[%s2354_s0] sm:$0xff]  ;;  %v1339_v47 = vpack.c.bf16 %v190_v46, %v189_v45  ;;  %v192_v49 = vld [vmem:[%s2353_s27 + $0x78] sm:$0xff]  ;;  %v274_v51 = vld [vmem:[%s2355_s8 + $0x8] sm:$0xff] }
  0x22   :  { %1308 = vmatprep.subr.bf16.mxu0 %v1576_v3  ;;  %v1342_v50 = vpack.c.bf16 %v192_v49, %v191_v48  ;;  %v276_v52 = vld [vmem:[%s2355_s8 + $0x18] sm:$0xff]  ;;  %v273_v53 = vld [vmem:[%s2355_s8] sm:$0xff]  ;;  %v275_v55 = vld [vmem:[%s2355_s8 + $0x10] sm:$0xff] }
  0x23   :  { %1331 = vmatpush3.bf16.msra.mxu1 %v1330_v30  ;;  %v1344_v54 = vpack.c.bf16 %v276_v52, %v274_v51  ;;  %v278_v56 = vld [vmem:[%s2355_s8 + $0x28] sm:$0xff]  ;;  %v280_v57 = vld [vmem:[%s2355_s8 + $0x38] sm:$0xff]  ;;  %v1346_v58 = vpack.c.bf16 %v275_v55, %v273_v53  ;;  %v277_v60 = vld [vmem:[%s2355_s8 + $0x20] sm:$0xff] }
  0x24   :  { %1332 = vmatprep.subr.bf16.mxu1 %v1576_v3  ;;  %v1348_v59 = vpack.c.bf16 %v280_v57, %v278_v56  ;;  %v279_v61 = vld [vmem:[%s2355_s8 + $0x30] sm:$0xff]  ;;  %v282_v62 = vld [vmem:[%s2355_s8 + $0x48] sm:$0xff]  ;;  %v284_v63 = vld [vmem:[%s2355_s8 + $0x58] sm:$0xff] }
  0x25   :  { %1310 = vmatpush3.bf16.msra.mxu0 %v1309_v27  ;;  %v1350_v0 = vpack.c.bf16 %v279_v61, %v277_v60  ;;  %v1352_v1 = vpack.c.bf16 %v284_v63, %v282_v62  ;;  %v281_v2 = vld [vmem:[%s2355_s8 + $0x40] sm:$0xff]  ;;  %v283_v4 = vld [vmem:[%s2355_s8 + $0x50] sm:$0xff]  ;;  %v286_v5 = vld [vmem:[%s2355_s8 + $0x68] sm:$0xff] }
  0x26   :  { %1311 = vmatprep.subr.bf16.mxu0 %v1576_v3  ;;  %v288_v7 = vld [vmem:[%s2355_s8 + $0x78] sm:$0xff]  ;;  %v1354_v8 = vpack.c.bf16 %v283_v4, %v281_v2  ;;  %v285_v10 = vld [vmem:[%s2355_s8 + $0x60] sm:$0xff]  ;;  %v287_v11 = vld [vmem:[%s2355_s8 + $0x70] sm:$0xff] }
  0x27   :  { %1334 = vmatpush3.bf16.msra.mxu1 %v1333_v36  ;;  %v1356_v9 = vpack.c.bf16 %v288_v7, %v286_v5  ;;  %v290_v12 = vld [vmem:[%s2355_s8 + $0x88] sm:$0xff]  ;;  %v292_v13 = vld [vmem:[%s2355_s8 + $0x98] sm:$0xff]  ;;  %v1358_v14 = vpack.c.bf16 %v287_v11, %v285_v10  ;;  %v289_v16 = vld [vmem:[%s2355_s8 + $0x80] sm:$0xff] }
  0x28   :  { %1335 = vmatprep.subr.bf16.mxu1 %v1576_v3  ;;  %v1360_v15 = vpack.c.bf16 %v292_v13, %v290_v12  ;;  %v291_v17 = vld [vmem:[%s2355_s8 + $0x90] sm:$0xff]  ;;  %v294_v18 = vld [vmem:[%s2355_s8 + $0xa8] sm:$0xff]  ;;  %v296_v19 = vld [vmem:[%s2355_s8 + $0xb8] sm:$0xff]  ;;  %v307_v13 = vlaneseq }
  0x29   :  { %1313 = vmatpush3.bf16.msra.mxu0 %v1312_v33  ;;  %v1362_v20 = vpack.c.bf16 %v291_v17, %v289_v16  ;;  %v1364_v21 = vpack.c.bf16 %v296_v19, %v294_v18  ;;  %v293_v22 = vld [vmem:[%s2355_s8 + $0xa0] sm:$0xff]  ;;  %v295_v23 = vld [vmem:[%s2355_s8 + $0xb0] sm:$0xff]  ;;  %v298_v24 = vld [vmem:[%s2355_s8 + $0xc8] sm:$0xff] }
  0x2a   :  { %1314 = vmatprep.subr.bf16.mxu0 %v1576_v3  ;;  %v300_v25 = vld [vmem:[%s2355_s8 + $0xd8] sm:$0xff]  ;;  %v1366_v26 = vpack.c.bf16 %v295_v23, %v293_v22  ;;  %v925_v28 = vld [vmem:[%s2356_s6] ss:$0 sm:$0xff]  ;;  %v299_v36 = vld [vmem:[%s2355_s8 + $0xd0] sm:$0xff] }
  0x2b   :  { %1337 = vmatpush3.bf16.msra.mxu1 %v1336_v42  ;;  %v1368_v27 = vpack.c.bf16 %v300_v25, %v298_v24  ;;  %v175_v32 = vld [vmem:[%s2327_s18] sm:$0xff]  ;;  %v302_v38 = vld [vmem:[%s2355_s8 + $0xe8] sm:$0xff]  ;;  %v303_v42 = vld [vmem:[%s2355_s8 + $0xf0] sm:$0xff]  ;;  %s2360_s18 = sld [smem:[#allocation10_spill]] }
  0x2c   :  { %1338 = vmatprep.subr.bf16.mxu1 %v1576_v3  ;;  %v297_v35 = vld [vmem:[%s2355_s8 + $0xc0] sm:$0xff]  ;;  %v405_v45 = vld [vmem:[%s2357_s3 + $0x8] sm:$0xff]  ;;  %v406_v46 = vld [vmem:[%s2357_s3 + $0x10] sm:$0xff] }
  0x2d   :  { %1316 = vmatpush3.bf16.msra.mxu0 %v1315_v39  ;;  %v1370_v37 = vpack.c.bf16 %v299_v36, %v297_v35  ;;  %v304_v39 = vld [vmem:[%s2355_s8 + $0xf8] sm:$0xff]  ;;  %v301_v41 = vld [vmem:[%s2355_s8 + $0xe0] sm:$0xff]  ;;  %v409_v51 = vld [vmem:[%s2357_s3 + $0x28] sm:$0xff]  ;;  %s2359_s8 = sld [smem:[#allocation16_spill]] }
  0x2e   :  { %1317 = vmatprep.subr.bf16.mxu0 %v1576_v3  ;;  %v1372_v40 = vpack.c.bf16 %v304_v39, %v302_v38  ;;  %v407_v48 = vld [vmem:[%s2357_s3 + $0x18] sm:$0xff]  ;;  %v926_v53 = vld [vmem:[%s2358_s10] ss:$0 sm:$0xff]  ;;  %v410_v60 = vld [vmem:[%s2357_s3 + $0x30] sm:$0xff] }
  0x2f   :  { %1340 = vmatpush3.bf16.msra.mxu1 %v1339_v47  ;;  %v1380_v49 = vpack.c.bf16 %v407_v48, %v406_v46  ;;  %v271_v57 = vld [vmem:[%s2328_s19] sm:$0xff]  ;;  %v411_v61 = vld [vmem:[%s2357_s3 + $0x38] sm:$0xff]  ;;  %v414_v2 = vld [vmem:[%s2357_s3 + $0x50] sm:$0xff] }
  0x30   :  { %1341 = vmatprep.subr.bf16.mxu1 %v1576_v3  ;;  %v1386_v62 = vpack.c.bf16 %v411_v61, %v410_v60  ;;  %v412_v63 = vld [vmem:[%s2357_s3 + $0x40] sm:$0xff]  ;;  %v415_v4 = vld [vmem:[%s2357_s3 + $0x58] sm:$0xff]  ;;  %v418_v10 = vld [vmem:[%s2357_s3 + $0x70] sm:$0xff] }
  0x31   :  { %1319 = vmatpush3.bf16.msra.mxu0 %v1318_v43  ;;  %v1374_v43 = vpack.c.bf16 %v303_v42, %v301_v41  ;;  %v1392_v5 = vpack.c.bf16 %v415_v4, %v414_v2  ;;  %v416_v7 = vld [vmem:[%s2357_s3 + $0x60] sm:$0xff]  ;;  %v419_v11 = vld [vmem:[%s2357_s3 + $0x78] sm:$0xff]  ;;  %v501_v36 = vld [vmem:[%s2361_s2 + $0x8] sm:$0xff] }
  0x32   :  { %1345 = vmatprep.subr.bf16.mxu0 %v1344_v54  ;;  %v1398_v12 = vpack.c.bf16 %v419_v11, %v418_v10  ;;  %v500_v35 = vld [vmem:[%s2361_s2] sm:$0xff]  ;;  %v503_v39 = vld [vmem:[%s2361_s2 + $0x18] sm:$0xff]  ;;  %v505_v42 = vld [vmem:[%s2361_s2 + $0x28] sm:$0xff] }
  0x33   :  { %1343 = vmatpush3.bf16.msra.mxu1 %v1342_v50  ;;  %v408_v50 = vld [vmem:[%s2357_s3 + $0x20] sm:$0xff]  ;;  %v1401_v38 = vpack.c.bf16 %v501_v36, %v500_v35  ;;  %v509_v48 = vld [vmem:[%s2361_s2 + $0x48] sm:$0xff]  ;;  %v598_v61 = vld [vmem:[%s2321_s12 + $0x10] sm:$0xff] }
  0x34   :  { %1084 = vmatmul.mubr.f32.vlgmr.msra.gmra.mrb[0].mxu0 %v80_v44  ;;  %1376 = vmatprep.subr.bf16.mxu1 %v1576_v3  ;;  %v404_v44 = vld [vmem:[%s2357_s3] sm:$0xff]  ;;  %v1383_v52 = vpack.c.bf16 %v409_v51, %v408_v50  ;;  %v510_v50 = vld [vmem:[%s2361_s2 + $0x50] sm:$0xff]  ;;  %v511_v51 = vld [vmem:[%s2361_s2 + $0x58] sm:$0xff] }
  0x35   :  { %381 = vmatprep.mubr.f32.mxu0 %v1578_v6  ;;  %1347 = vmatpush1.bf16.msra.mxu0 %v1346_v58  ;;  %v1377_v47 = vpack.c.bf16 %v405_v45, %v404_v44  ;;  %v305_v17 = vld [vmem:[%s2359_s8] sm:$0x3]  ;;  %v506_v44 = vld [vmem:[%s2361_s2 + $0x30] sm:$0xff]  ;;  %v507_v45 = vld [vmem:[%s2361_s2 + $0x38] sm:$0xff] }
  0x36   :  { %1349 = vmatprep.subr.bf16.mxu0 %v1348_v59  ;;  %v504_v41 = vld [vmem:[%s2361_s2 + $0x20] sm:$0xff]  ;;  %v1410_v46 = vpack.c.bf16 %v507_v45, %v506_v44  ;;  %v597_v60 = vld [vmem:[%s2321_s12 + $0x8] sm:$0xff]  ;;  %v697_v35 = vld [vmem:[%s2323_s14 + $0x38] sm:$0xff] }
  0x37   :  { %v601_v2 = vld [vmem:[%s2321_s12 + $0x28] sm:$0xff] }
  0x38   :  { %v605_v10 = vld [vmem:[%s2321_s12 + $0x48] sm:$0xff] }
  0x39   :  { %1351 = vmatpush1.bf16.msra.mxu0 %v1350_v0  ;;  %v413_v0 = vld [vmem:[%s2357_s3 + $0x48] sm:$0xff] }
  0x3a   :  { %1353 = vmatprep.subr.bf16.mxu0 %v1352_v1  ;;  %v1389_v1 = vpack.c.bf16 %v413_v0, %v412_v63  ;;  %v599_v63 = vld [vmem:[%s2321_s12 + $0x18] sm:$0xff]  ;;  %v703_v44 = vld [vmem:[%s2323_s14 + $0x68] sm:$0xff] }
  0x3b   :  { %v1428_v0 = vpack.c.bf16 %v599_v63, %v598_v61 }
  0x3d   :  { %1355 = vmatpush1.bf16.msra.mxu0 %v1354_v8  ;;  %v417_v8 = vld [vmem:[%s2357_s3 + $0x68] sm:$0xff] }
  0x3e   :  { %1357 = vmatprep.subr.bf16.mxu0 %v1356_v9  ;;  %v1395_v9 = vpack.c.bf16 %v417_v8, %v416_v7  ;;  %v603_v7 = vld [vmem:[%s2321_s12 + $0x38] sm:$0xff] }
  0x41   :  { %1359 = vmatpush1.bf16.msra.mxu0 %v1358_v14  ;;  %v308_v14 = vshrl.u32 %v307_v13, 7  ;;  %v607_v13 = vld [vmem:[%s2321_s12 + $0x58] sm:$0xff] }
  0x42   :  { %1361 = vmatprep.subr.bf16.mxu0 %v1360_v15 }
  0x43   :  { %v309_v15 = vsub.s32 0, %v308_v14  ;;  %v313_v16 = vsub.s32 1, %v308_v14 }
  0x45   :  { %1363 = vmatpush1.bf16.msra.mxu0 %v1362_v20  ;;  %v310_v18 = vrot.slane %v305_v17, %v309_v15  ;;  %v314_v19 = vrot.slane %v305_v17, %v313_v16  ;;  %v927_v17 = vld [vmem:[%s2362_s7] ss:$0 sm:$0xff] }
  0x46   :  { %1365 = vmatprep.subr.bf16.mxu0 %v1364_v21 }
  0x49   :  { %1367 = vmatpush1.bf16.msra.mxu0 %v1366_v26 }
  0x4a   :  { %1369 = vmatprep.subr.bf16.mxu0 %v1368_v27 }
  0x4d   :  { %1371 = vmatpush1.bf16.msra.mxu0 %v1370_v37  ;;  %v502_v37 = vld [vmem:[%s2361_s2 + $0x10] sm:$0xff] }
  0x4e   :  { %1373 = vmatprep.subr.bf16.mxu0 %v1372_v40  ;;  %v1404_v40 = vpack.c.bf16 %v503_v39, %v502_v37  ;;  %v698_v37 = vld [vmem:[%s2323_s14 + $0x40] sm:$0xff] }
  0x51   :  { %1375 = vmatpush1.bf16.msra.mxu0 %v1374_v43  ;;  %v1407_v43 = vpack.c.bf16 %v505_v42, %v504_v41  ;;  %v701_v41 = vld [vmem:[%s2323_s14 + $0x58] sm:$0xff] }
  0x52   :  { %1400 = vmatprep.subr.bf16.mxu0 %v1576_v3 }
 0x107   :  { %v170_v29 = vpop.f32.mrb[0].mxu0 }
 0x108   :  { %v171_v30 = vadd.f32 %v925_v28, %v170_v29  ;;  %v1085_v31 = vpop.f32.mrb[1].mxu0  ;;  %v390_v29 = vld [vmem:[%s2360_s18] sm:$0xff] }
 0x10a   :  { %v174_v33 = vmax.f32 %v171_v30, 0.0 }
 0x10c   :  { %v176_v34 = vmul.f32 %v175_v32, %v174_v33 }
 0x10e   :  { %1119 = vmatmul.mubr.f32.vlgmr.msra.gmra.mrb[0].mxu1 %v176_v34 }
 0x10f   :  { %1153 = vmatprep.mubr.msk.f32.mxu1 %vm1577_vm0, %v1578_v6  ;;  %1378 = vmatpush3.bf16.msra.mxu1 %v1377_v47  ;;  %v508_v47 = vld [vmem:[%s2361_s2 + $0x40] sm:$0xff] }
 0x110   :  { %1379 = vmatprep.subr.bf16.mxu1 %v1576_v3 }
 0x113   :  { %1381 = vmatpush3.bf16.msra.mxu1 %v1380_v49  ;;  %v1413_v49 = vpack.c.bf16 %v509_v48, %v508_v47  ;;  %v705_v47 = vld [vmem:[%s2323_s14 + $0x78] sm:$0xff] }
 0x114   :  { %1382 = vmatprep.subr.bf16.mxu1 %v1576_v3 }
 0x117   :  { %1384 = vmatpush3.bf16.msra.mxu1 %v1383_v52  ;;  %v1416_v52 = vpack.c.bf16 %v511_v51, %v510_v50  ;;  %v609_v50 = vld [vmem:[%s2321_s12 + $0x68] sm:$0xff] }
 0x118   :  { %1385 = vmatprep.subr.bf16.mxu1 %v1576_v3 }
 0x11b   :  { %1387 = vmatpush3.bf16.msra.mxu1 %v1386_v62 }
 0x11c   :  { %1388 = vmatprep.subr.bf16.mxu1 %v1576_v3 }
 0x11f   :  { %1390 = vmatpush3.bf16.msra.mxu1 %v1389_v1  ;;  %v600_v1 = vld [vmem:[%s2321_s12 + $0x20] sm:$0xff] }
 0x120   :  { %1391 = vmatprep.subr.bf16.mxu1 %v1576_v3  ;;  %v1431_v4 = vpack.c.bf16 %v601_v2, %v600_v1  ;;  %v789_v1 = vld [vmem:[%s2325_s16 + $0x18] sm:$0xff] }
 0x123   :  { %1393 = vmatpush3.bf16.msra.mxu1 %v1392_v5  ;;  %v602_v5 = vld [vmem:[%s2321_s12 + $0x30] sm:$0xff] }
 0x124   :  { %1394 = vmatprep.subr.bf16.mxu1 %v1576_v3  ;;  %v1434_v8 = vpack.c.bf16 %v603_v7, %v602_v5  ;;  %v791_v5 = vld [vmem:[%s2325_s16 + $0x28] sm:$0xff] }
 0x127   :  { %1396 = vmatpush3.bf16.msra.mxu1 %v1395_v9  ;;  %v604_v9 = vld [vmem:[%s2321_s12 + $0x40] sm:$0xff] }
 0x128   :  { %1397 = vmatprep.subr.bf16.mxu1 %v1576_v3  ;;  %v1437_v11 = vpack.c.bf16 %v605_v10, %v604_v9  ;;  %v794_v10 = vld [vmem:[%s2325_s16 + $0x40] sm:$0xff] }
 0x12b   :  { %1399 = vmatpush3.bf16.msra.mxu1 %v1398_v12  ;;  %v606_v12 = vld [vmem:[%s2321_s12 + $0x50] sm:$0xff] }
 0x12c   :  { %1424 = vmatprep.subr.bf16.mxu1 %v1576_v3  ;;  %v1440_v15 = vpack.c.bf16 %v607_v13, %v606_v12  ;;  %v796_v13 = vld [vmem:[%s2325_s16 + $0x50] sm:$0xff] }
 0x1e1   :  { %v266_v54 = vpop.f32.mrb[0].mxu1 }
 0x1e2   :  { %v267_v55 = vadd.f32 %v926_v53, %v266_v54  ;;  %v1120_v56 = vpop.f32.mrb[1].mxu1  ;;  %v512_v53 = vld [vmem:[%s2361_s2 + $0x60] sm:$0xff]  ;;  %v513_v54 = vld [vmem:[%s2361_s2 + $0x68] sm:$0xff] }
 0x1e3   :  { %v514_v56 = vld [vmem:[%s2361_s2 + $0x70] sm:$0xff] }
 0x1e4   :  { %v270_v58 = vmax.f32 %v267_v55, 0.0  ;;  %v1419_v55 = vpack.c.bf16 %v513_v54, %v512_v53  ;;  %v928_v54 = vld [vmem:[%s2320_s11] ss:$0 sm:$0xff] }
 0x1e6   :  { %v272_v59 = vmul.f32 %v271_v57, %v270_v58  ;;  %v515_v57 = vld [vmem:[%s2361_s2 + $0x78] sm:$0xff] }
 0x1e7   :  { %v1422_v58 = vpack.c.bf16 %v515_v57, %v514_v56 }
 0x1e8   :  { %382 = vmatmul.mubr.f32.vlgmr.msra.gmra.mrb[2].mxu0 %v272_v59  ;;  %v596_v59 = vld [vmem:[%s2321_s12] sm:$0xff] }
 0x1e9   :  { %1188 = vmatprep.mubr.msk.f32.mxu0 %vm1577_vm0, %v1578_v6  ;;  %1402 = vmatpush3.bf16.msra.mxu0 %v1401_v38  ;;  %v1425_v62 = vpack.c.bf16 %v597_v60, %v596_v59  ;;  %v699_v38 = vld [vmem:[%s2323_s14 + $0x48] sm:$0xff]  ;;  %v594_v60 = vld [vmem:[%s2330_s21] sm:$0xff] }
 0x1ea   :  { %1403 = vmatprep.subr.bf16.mxu0 %v1576_v3  ;;  %v1461_v39 = vpack.c.bf16 %v699_v38, %v698_v37  ;;  %v787_v59 = vld [vmem:[%s2325_s16 + $0x8] sm:$0xff] }
 0x1ed   :  { %1405 = vmatpush3.bf16.msra.mxu0 %v1404_v40  ;;  %v700_v40 = vld [vmem:[%s2323_s14 + $0x50] sm:$0xff] }
 0x1ee   :  { %1406 = vmatprep.subr.bf16.mxu0 %v1576_v3  ;;  %v1464_v42 = vpack.c.bf16 %v701_v41, %v700_v40 }
 0x1f1   :  { %1408 = vmatpush3.bf16.msra.mxu0 %v1407_v43  ;;  %v702_v43 = vld [vmem:[%s2323_s14 + $0x60] sm:$0xff] }
 0x1f2   :  { %1409 = vmatprep.subr.bf16.mxu0 %v1576_v3  ;;  %v1467_v45 = vpack.c.bf16 %v703_v44, %v702_v43 }
 0x1f5   :  { %1411 = vmatpush3.bf16.msra.mxu0 %v1410_v46  ;;  %v704_v46 = vld [vmem:[%s2323_s14 + $0x70] sm:$0xff] }
 0x1f6   :  { %1412 = vmatprep.subr.bf16.mxu0 %v1576_v3  ;;  %v1470_v48 = vpack.c.bf16 %v705_v47, %v704_v46 }
 0x1f9   :  { %1414 = vmatpush3.bf16.msra.mxu0 %v1413_v49  ;;  %v608_v49 = vld [vmem:[%s2321_s12 + $0x60] sm:$0xff] }
 0x1fa   :  { %1415 = vmatprep.subr.bf16.mxu0 %v1576_v3  ;;  %v1443_v51 = vpack.c.bf16 %v609_v50, %v608_v49 }
 0x1fd   :  { %1417 = vmatpush3.bf16.msra.mxu0 %v1416_v52  ;;  %v610_v52 = vld [vmem:[%s2321_s12 + $0x70] sm:$0xff] }
 0x1fe   :  { %1418 = vmatprep.subr.bf16.mxu0 %v1576_v3 }
 0x201   :  { %1420 = vmatpush3.bf16.msra.mxu0 %v1419_v55 }
 0x202   :  { %1421 = vmatprep.subr.bf16.mxu0 %v1576_v3 }
 0x205   :  { %1423 = vmatpush3.bf16.msra.mxu0 %v1422_v58  ;;  %v786_v58 = vld [vmem:[%s2325_s16] sm:$0xff] }
 0x206   :  { %1448 = vmatprep.subr.bf16.mxu0 %v1576_v3 }
 0x2bb   :  { %v383_v20 = vpop.f32.mrb[2].mxu0 }
 0x2bc   :  { %v385_v21 = vpop.f32.mrb[3].mxu0  ;;  %v384_v22 = vadd.f32 %v383_v20, %v310_v18 }
 0x2bd   :  { %v386_v23 = vadd.f32 %v385_v21, %v314_v19  ;;  %v690_v21 = vld [vmem:[%s2323_s14] sm:$0xff] }
 0x2be   :  { %v396_v26 = vmul.f32 %v384_v22, %v384_v22 }
 0x2bf   :  { %v388_v24 = vmul.f32 1.442695, %v386_v23  ;;  %v394_v25 = vmul.f32 2.0, %v386_v23  ;;  %v498_v23 = vld [vmem:[%s2329_s20] sm:$0xff] }
 0x2c1   :  { %1502 = vpow2.f32 %v388_v24  ;;  %v395_v27 = vadd.f32 1.0, %v394_v25 }
 0x2c3   :  { %v397_v28 = vsub.f32 %v395_v27, %v396_v26  ;;  %v692_v27 = vld [vmem:[%s2323_s14 + $0x10] sm:$0xff] }
 0x2cb   :  { %v1503_v30 = vpop.eup %1502 }
 0x2cc   :  { %v398_v31 = vmul.f32 %v1503_v30, %v1503_v30  ;;  %v391_v32 = vmul.f32 %v1503_v30, %v390_v29  ;;  %v694_v30 = vld [vmem:[%s2323_s14 + $0x20] sm:$0xff] }
 0x2ce   :  { %v399_v33 = vsub.f32 %v397_v28, %v398_v31  ;;  %v2013_v34 = vadd.f32 %v391_v32, %v384_v22  ;;  %v691_v22 = vld [vmem:[%s2323_s14 + $0x8] sm:$0xff]  ;;  %v693_v28 = vld [vmem:[%s2323_s14 + $0x18] sm:$0xff] }
 0x2cf   :  { %v1449_v25 = vpack.c.bf16 %v691_v22, %v690_v21  ;;  %v1452_v29 = vpack.c.bf16 %v693_v28, %v692_v27  ;;  %v695_v31 = vld [vmem:[%s2323_s14 + $0x28] sm:$0xff]  ;;  %v930_v21 = vld [vmem:[%s2324_s15] ss:$0 sm:$0xff] }
 0x2d0   :  { %400 = vadd.xlane.f32.xlu0 %v399_v33  ;;  %1154 = vmatmul.mubr.f32.vlgmr.msra.gmra.mrb[2].mxu1 %v2013_v34  ;;  %393 = vst [vmem:[#allocation4] sm:$0xff] %v2013_v34  ;;  %v1455_v32 = vpack.c.bf16 %v695_v31, %v694_v30  ;;  %v696_v33 = vld [vmem:[%s2323_s14 + $0x30] sm:$0xff] }
 0x2d1   :  { %1223 = vmatprep.mubr.msk.f32.mxu1 %vm1577_vm0, %v1578_v6  ;;  %1426 = vmatpush3.bf16.msra.mxu1 %v1425_v62  ;;  %v1458_v36 = vpack.c.bf16 %v697_v35, %v696_v33  ;;  %v1473_v62 = vpack.c.bf16 %v787_v59, %v786_v58 }
 0x2d2   :  { %1427 = vmatprep.subr.bf16.mxu1 %v1576_v3 }
 0x2d5   :  { %1429 = vmatpush3.bf16.msra.mxu1 %v1428_v0  ;;  %v788_v0 = vld [vmem:[%s2325_s16 + $0x10] sm:$0xff] }
 0x2d6   :  { %1430 = vmatprep.subr.bf16.mxu1 %v1576_v3  ;;  %v1476_v2 = vpack.c.bf16 %v789_v1, %v788_v0 }
 0x2d9   :  { %1432 = vmatpush3.bf16.msra.mxu1 %v1431_v4  ;;  %v790_v4 = vld [vmem:[%s2325_s16 + $0x20] sm:$0xff] }
 0x2da   :  { %1433 = vmatprep.subr.bf16.mxu1 %v1576_v3  ;;  %v1479_v7 = vpack.c.bf16 %v791_v5, %v790_v4 }
 0x2dd   :  { %1435 = vmatpush3.bf16.msra.mxu1 %v1434_v8  ;;  %v792_v8 = vld [vmem:[%s2325_s16 + $0x30] sm:$0xff] }
 0x2de   :  { %1436 = vmatprep.subr.bf16.mxu1 %v1576_v3 }
 0x2e1   :  { %1438 = vmatpush3.bf16.msra.mxu1 %v1437_v11  ;;  %v795_v11 = vld [vmem:[%s2325_s16 + $0x48] sm:$0xff] }
 0x2e2   :  { %1439 = vmatprep.subr.bf16.mxu1 %v1576_v3  ;;  %v1485_v12 = vpack.c.bf16 %v795_v11, %v794_v10 }
 0x2e5   :  { %1441 = vmatpush3.bf16.msra.mxu1 %v1440_v15 }
 0x2e6   :  { %1442 = vmatprep.subr.bf16.mxu1 %v1576_v3 }
 0x2e9   :  { %1444 = vmatpush3.bf16.msra.mxu1 %v1443_v51 }
 0x2ea   :  { %1445 = vmatprep.subr.bf16.mxu1 %v1576_v3 }
 0x35d   :  { %v401_v14 = vpop.xlane.xlu0 %400 }
 0x35e   :  { %v402_v16 = vmul.f32 -0.5, %v401_v14  ;;  %v797_v14 = vld [vmem:[%s2325_s16 + $0x58] sm:$0xff] }
 0x35f   :  { %v1488_v15 = vpack.c.bf16 %v797_v14, %v796_v13 }
 0x360   :  { %403 = vst [vmem:[%s2335_s26] sm:$0xff] %v402_v16  ;;  %v798_v16 = vld [vmem:[%s2325_s16 + $0x60] sm:$0xff] }
 0x3a3   :  { %v493_v18 = vpop.f32.mrb[2].mxu1 }
 0x3a4   :  { %v494_v19 = vadd.f32 %v927_v17, %v493_v18  ;;  %v1155_v20 = vpop.f32.mrb[3].mxu1  ;;  %v799_v17 = vld [vmem:[%s2325_s16 + $0x68] sm:$0xff] }
 0x3a5   :  { %v1491_v18 = vpack.c.bf16 %v799_v17, %v798_v16  ;;  %v801_v20 = vld [vmem:[%s2325_s16 + $0x78] sm:$0xff] }
 0x3a6   :  { %v497_v24 = vmax.f32 %v494_v19, 0.0  ;;  %v800_v19 = vld [vmem:[%s2325_s16 + $0x70] sm:$0xff] }
 0x3a8   :  { %v499_v26 = vmul.f32 %v498_v23, %v497_v24  ;;  %v1494_v23 = vpack.c.bf16 %v801_v20, %v800_v19 }
 0x3aa   :  { %1189 = vmatmul.mubr.f32.vlgmr.msra.gmra.mrb[4].mxu0 %v499_v26  ;;  %v784_v26 = vld [vmem:[%s2331_s22] sm:$0xff] }
 0x3ab   :  { %1450 = vmatpush3.bf16.msra.mxu0 %v1449_v25  ;;  %1258 = vmatprep.mubr.msk.f32.mxu0 %vm1577_vm0, %v1578_v6 }
 0x3ac   :  { %1451 = vmatprep.subr.bf16.mxu0 %v1576_v3 }
 0x3af   :  { %1453 = vmatpush3.bf16.msra.mxu0 %v1452_v29 }
 0x3b0   :  { %1454 = vmatprep.subr.bf16.mxu0 %v1576_v3 }
 0x3b3   :  { %1456 = vmatpush3.bf16.msra.mxu0 %v1455_v32 }
 0x3b4   :  { %1457 = vmatprep.subr.bf16.mxu0 %v1576_v3 }
 0x3b7   :  { %1459 = vmatpush3.bf16.msra.mxu0 %v1458_v36 }
 0x3b8   :  { %1460 = vmatprep.subr.bf16.mxu0 %v1576_v3 }
 0x3bb   :  { %1462 = vmatpush3.bf16.msra.mxu0 %v1461_v39 }
 0x3bc   :  { %1463 = vmatprep.subr.bf16.mxu0 %v1576_v3 }
 0x3bf   :  { %1465 = vmatpush3.bf16.msra.mxu0 %v1464_v42 }
 0x3c0   :  { %1466 = vmatprep.subr.bf16.mxu0 %v1576_v3 }
 0x3c3   :  { %1468 = vmatpush3.bf16.msra.mxu0 %v1467_v45 }
 0x3c4   :  { %1469 = vmatprep.subr.bf16.mxu0 %v1576_v3 }
 0x3c7   :  { %1471 = vmatpush3.bf16.msra.mxu0 %v1470_v48 }
 0x3ca   :  { %1259 = vmatmul.mubr.f32.vlgmr.msra.gmra.mrb[6].mxu0 %v2013_v34  ;;  %v611_v34 = vld [vmem:[%s2321_s12 + $0x78] sm:$0xff] }
 0x3cb   :  { %v1446_v53 = vpack.c.bf16 %v611_v34, %v610_v52 }
 0x3cd   :  { %1447 = vmatpush3.bf16.msra.mxu1 %v1446_v53 }
 0x3ce   :  { %1472 = vmatprep.subr.bf16.mxu1 %v1576_v3 }
 0x47d   :  { %v589_v55 = vpop.f32.mrb[4].mxu0 }
 0x47e   :  { %v590_v56 = vadd.f32 %v928_v54, %v589_v55  ;;  %v1190_v57 = vpop.f32.mrb[5].mxu0 }
 0x480   :  { %v593_v61 = vmax.f32 %v590_v56, 0.0 }
 0x482   :  { %v595_v63 = vmul.f32 %v594_v60, %v593_v61 }
 0x484   :  { %1224 = vmatmul.mubr.f32.vlgmr.msra.gmra.mrb[4].mxu1 %v595_v63 }
 0x485   :  { %1474 = vmatpush3.bf16.msra.mxu1 %v1473_v62  ;;  %1293 = vmatprep.mubr.msk.f32.mxu1 %vm1577_vm0, %v1578_v6  ;;  %v793_v6 = vld [vmem:[%s2325_s16 + $0x38] sm:$0xff]  ;;  %s1579_s16 = smov [#allocation4]  }
 0x486   :  { %1475 = vmatprep.subr.bf16.mxu1 %v1576_v3  ;;  %v1482_v9 = vpack.c.bf16 %v793_v6, %v792_v8  ;;  %s896_s0 = sshll.u32 %s1579_s16, 4  ;;  %s897_s0 = int_to_ptr.vmem [resolvable:$true] %s896_s0 }
 0x487   :  { %s1506_s15 = scalar_lea.vmem %s897_s0, 128  ;;  %p1511_p1 = scmp.lt.s32.totalorder %s897_s0, %s897_s0 }
 0x488   :  { %p1507_p0 = scmp.ne.s32.totalorder %s897_s0, %s1506_s15  ;;  %p1512_p2 = scmp.lt.s32.totalorder %s1506_s15, %s1506_s15 }
 0x489   :  { %1477 = vmatpush3.bf16.msra.mxu1 %v1476_v2 }
 0x48a   :  { %1478 = vmatprep.subr.bf16.mxu1 %v1576_v3  ;;  %p1513_p3 = por %p1512_p2, %p1511_p1 }
 0x48c   :  { %p1514_p4 = pnand %p1513_p3, %p1507_p0 }
 0x48d   :  { %1480 = vmatpush3.bf16.msra.mxu1 %v1479_v7 }
 0x48e   :  { %1481 = vmatprep.subr.bf16.mxu1 %v1576_v3 }
 0x491   :  { %1483 = vmatpush3.bf16.msra.mxu1 %v1482_v9 }
 0x492   :  { %1484 = vmatprep.subr.bf16.mxu1 %v1576_v3 }
 0x495   :  { %1486 = vmatpush3.bf16.msra.mxu1 %v1485_v12 }
 0x496   :  { %1487 = vmatprep.subr.bf16.mxu1 %v1576_v3 }
 0x499   :  { %1489 = vmatpush3.bf16.msra.mxu1 %v1488_v15 }
 0x49a   :  { %1490 = vmatprep.subr.bf16.mxu1 %v1576_v3 }
 0x49d   :  { %v779_v22 = vpop.f32.mrb[6].mxu0  ;;  %1492 = vmatpush3.bf16.msra.mxu1 %v1491_v18 }
 0x49e   :  { %v780_v24 = vadd.f32 %v930_v21, %v779_v22  ;;  %v1260_v25 = vpop.f32.mrb[7].mxu0  ;;  %1493 = vmatprep.subr.bf16.mxu1 %v1576_v3 }
 0x4a0   :  { %1504 = vtanh.f32 %v780_v24 }
 0x4a1   :  { %1495 = vmatpush3.bf16.msra.mxu1 %v1494_v23 }
 0x4aa   :  { %v1505_v27 = vpop.eup %1504 }
 0x4ab   :  { %v785_v28 = vmul.f32 %v1505_v27, %v784_v26 }
 0x4ad   :  { %1294 = vmatmul.mubr.f32.vlgmr.msra.gmra.mrb[6].mxu1 %v785_v28 }
 0x4ae   :  { %1517 = shalt.err (!%p1514_p4)
}
 0x4af   :  { %s1518_s19 = scalar_lea.hbm %s2333_s24, 128 }
 0x4b0   :  { %p1519_p5 = scmp.ne.s32.totalorder %s2333_s24, %s1518_s19  ;;  %p1522_p6 = scmp.lt.u32.totalorder %s1518_s19, %s2333_s24 }
 0x4b2   :  { %p1524_p7 = pnand %p1522_p6, %p1519_p5 }
 0x4b4   :  { %1527 = shalt.err (!%p1524_p7)
}
 0x4b5   :  { %899 = dma.vmem_to_hbm [thread:$0]  %s897_s0, 128, %s2333_s24, [#allocation5]   ;;  %v929_v3 = vld [vmem:[%s2322_s13] ss:$0 sm:$0xff] }
 0x4b6   :  { %s1580_s5 = smov [#allocation2]  }
 0x4b7   :  { %s886_s12 = sshll.u32 %s1580_s5, 4  ;;  %s887_s12 = int_to_ptr.vmem [resolvable:$true] %s886_s12 }
 0x4b8   :  { %s1528_s10 = scalar_lea.vmem %s887_s12, 128  ;;  %p1533_p9 = scmp.lt.s32.totalorder %s887_s12, %s887_s12 }
 0x4b9   :  { %p1529_p8 = scmp.ne.s32.totalorder %s887_s12, %s1528_s10  ;;  %p1534_p10 = scmp.lt.s32.totalorder %s1528_s10, %s1528_s10 }
 0x4bb   :  { %p1535_p11 = por %p1534_p10, %p1533_p9 }
 0x4bd   :  { %p1536_p12 = pnand %p1535_p11, %p1529_p8 }
 0x557   :  { %v685_v29 = vpop.f32.mrb[4].mxu1 }
 0x558   :  { %v686_v30 = vadd.f32 %v929_v3, %v685_v29  ;;  %v1225_v31 = vpop.f32.mrb[5].mxu1 }
 0x55a   :  { %689 = vst [vmem:[#allocation2] sm:$0xff] %v686_v30 }
 0x55b   :  { %1539 = shalt.err (!%p1536_p12)
}
 0x55c   :  { %s1540_s11 = scalar_lea.hbm %s2332_s23, 128 }
 0x55d   :  { %p1541_p13 = scmp.ne.s32.totalorder %s2332_s23, %s1540_s11  ;;  %p1544_p0 = scmp.lt.u32.totalorder %s1540_s11, %s2332_s23 }
 0x55f   :  { %p1546_p1 = pnand %p1544_p0, %p1541_p13 }
 0x561   :  { %1549 = shalt.err (!%p1546_p1)
}
 0x562   :  { %889 = dma.vmem_to_hbm [thread:$0]  %s887_s12, 128, %s2332_s23, [#allocation3]   ;;  %v931_v32 = vld [vmem:[%s2326_s17] ss:$0 sm:$0xff] }
 0x563   :  { %s1581_s16 = smov [#allocation6]  }
 0x564   :  { %s906_s0 = sshll.u32 %s1581_s16, 4  ;;  %s907_s0 = int_to_ptr.vmem [resolvable:$true] %s906_s0 }
 0x565   :  { %s1550_s15 = scalar_lea.vmem %s907_s0, 128  ;;  %p1555_p3 = scmp.lt.s32.totalorder %s907_s0, %s907_s0 }
 0x566   :  { %p1551_p2 = scmp.ne.s32.totalorder %s907_s0, %s1550_s15  ;;  %p1556_p4 = scmp.lt.s32.totalorder %s1550_s15, %s1550_s15 }
 0x568   :  { %p1557_p5 = por %p1556_p4, %p1555_p3 }
 0x56a   :  { %p1558_p6 = pnand %p1557_p5, %p1551_p2 }
 0x580   :  { %v875_v33 = vpop.f32.mrb[6].mxu1 }
 0x581   :  { %v876_v35 = vadd.f32 %v931_v32, %v875_v33  ;;  %v1295_v36 = vpop.f32.mrb[7].mxu1 }
 0x583   :  { %879 = vst [vmem:[#allocation6] sm:$0xff] %v876_v35 }
 0x584   :  { %1561 = shalt.err (!%p1558_p6)
}
 0x585   :  { %s1562_s14 = scalar_lea.hbm %s2334_s25, 128 }
 0x586   :  { %p1563_p7 = scmp.ne.s32.totalorder %s2334_s25, %s1562_s14  ;;  %p1566_p8 = scmp.lt.u32.totalorder %s1562_s14, %s2334_s25 }
 0x588   :  { %p1568_p9 = pnand %p1566_p8, %p1563_p7 }
 0x58a   :  { %1571 = shalt.err (!%p1568_p9)
}
 0x58b   :  { %909 = dma.vmem_to_hbm [thread:$0]  %s907_s0, 128, %s2334_s25, [#allocation5]  }
 0x58c   :  { %1572 = dma.done.wait [#allocation3], 128  }
 0x58d   :  { %1573 = vsyncadd [#allocation3], 4294967168 }
 0x58e   :  { %1574 = dma.done.wait [#allocation5], 256  }
 0x58f   :  { %1575 = vsyncadd [#allocation5], 4294967040 }
 0x590   :  { %923 = vsyncpa [#allocation3], 1 }
 0x591   :  { %924 = vsyncpa [#allocation5], 1 }

</bundles_post_ra>
